<compile_context>
chip_gen: v6e
topology: v6e:2x2x1
jax: 0.10.0
libtpu: 0.0.40
codegen_flags: <defaults>
</compile_context>

<pallas_src>
import jax
import jax.numpy as jnp
from jax import lax
from jax.experimental import pallas as pl
from jax.experimental.pallas import tpu as pltpu

EMBED = 32      # CLIP embedding dim (synthetic, small)
PATCH = 8       # patch size for the "ViT-like" image encoder
VOCAB = 64      # synthetic text vocabulary
SEQ   = 8       # text context length


def _vmem_spec():
    # whole-array block resident in VMEM (all shapes are tiny)
    return pl.BlockSpec(memory_space=pltpu.MemorySpace.VMEM)


# ----------------------------------------------------------------------------
# Single fused Pallas kernel: image encode + text encode + averaging + L2 norm
# ----------------------------------------------------------------------------
def _clip_fused_kernel(patches_ref, ids_ref, w_patch_ref, b_patch_ref,
                       w_img_proj_ref, tok_table_ref, w_txt_proj_ref,
                       img_out_ref, txt_out_ref):
    # patches: [V*B, P, Dp]   (V = 1 or 2 views, views stacked view-major)
    # ids:     [B, L] int32
    # w_patch: [Dp, E]  b_patch: [1, E]  w_img_proj: [E, E]
    # tok_table: [VOCAB, E]  w_txt_proj: [E, E]
    # outputs: img [B, E], txt [B, E]
    B, L = ids_ref.shape
    VOCAB_K = tok_table_ref.shape[0]
    VB = patches_ref.shape[0]

    # ---- image path ----------------------------------------------------------
    # mean-pool first (mean is linear -> exact), then 2-D matmuls on the MXU
    pooled = jnp.mean(patches_ref[...], axis=1)                        # [V*B, Dp]
    if VB == 2 * B:
        # two-view branch: the encoder is affine, so averaging the pooled patch
        # vectors equals averaging the encodings -> do it early (half the MXU rows)
        pooled = (pooled[:B, :] + pooled[B:, :]) * 0.5                 # [B, Dp]
    emb = jnp.dot(pooled, w_patch_ref[...],
                  preferred_element_type=jnp.float32) + b_patch_ref[...]
    img = jnp.dot(emb, w_img_proj_ref[...],
                  preferred_element_type=jnp.float32)                  # [B, E]

    # ---- text path: in-kernel "gather" as one-hot bag-of-words mean @ table --
    ids = ids_ref[...]                                                 # [B, L] int32
    iota_v = lax.broadcasted_iota(jnp.int32, (B, VOCAB_K), 1)          # [B, VOCAB]
    bow = jnp.zeros((B, VOCAB_K), jnp.float32)
    for l in range(L):                   # L is small and static -> unrolled adds
        bow = bow + (ids[:, l:l + 1] == iota_v).astype(jnp.float32)
    bow = bow * (1.0 / L)                                              # mean over seq
    tok_pooled = jnp.dot(bow, tok_table_ref[...],
                         preferred_element_type=jnp.float32)           # [B, E]
    txt = jnp.dot(tok_pooled, w_txt_proj_ref[...],
                  preferred_element_type=jnp.float32)                  # [B, E]

    # ---- fused L2 normalization (rsqrt -> EUP, multiply -> VPU) --------------
    img_out_ref[...] = img * lax.rsqrt(jnp.sum(img * img, axis=-1, keepdims=True))
    txt_out_ref[...] = txt * lax.rsqrt(jnp.sum(txt * txt, axis=-1, keepdims=True))


# ----------------------------------------------------------------------------
# Glue (reshapes / parameter setup) + single pallas_call wrapper
# ----------------------------------------------------------------------------
def _patchify(img):
    # [B', C, H, W] -> [B', P, C*ph*pw]  (non-overlapping patches, stride=PATCH,
    # i.e. the patch-embedding conv expressed as a matmul)
    Bp, C, H, W = img.shape
    ph = pw = PATCH
    x = img.reshape(Bp, C, H // ph, ph, W // pw, pw)
    x = x.transpose(0, 2, 4, 1, 3, 5)            # [B', Hp, Wp, C, ph, pw]
    return x.reshape(Bp, (H // ph) * (W // pw), C * ph * pw)


def clip_extractor_forward(image, text, params):
    """Equivalent of CLIPExtractor.forward (clip_forward, only_features=True)."""
    if image.ndim == 5:
        # Stack both views along the batch axis (view-major) -> one launch.
        views = jnp.concatenate([image[:, 0, ...], image[:, 1, ...]], axis=0)
        patches = _patchify(views.astype(jnp.float32))
    else:
        patches = _patchify(image.astype(jnp.float32))
    B = text.shape[0]

    img_feat, txt_feat = pl.pallas_call(
        _clip_fused_kernel,
        out_shape=(jax.ShapeDtypeStruct((B, EMBED), jnp.float32),
                   jax.ShapeDtypeStruct((B, EMBED), jnp.float32)),
        in_specs=[_vmem_spec()] * 7,
        out_specs=(_vmem_spec(), _vmem_spec()),
    )(patches, jnp.asarray(text, jnp.int32),
      params["w_patch"], params["b_patch"], params["w_img_proj"],
      params["tok_table"], params["w_txt_proj"])
    # TODO(synk): logit_scale / logits path unused because only_features=True.
    # TODO(synk): at real CLIP sizes, add a grid over the batch/patch axes with
    #             dimension_semantics=("parallel",) and bf16 MXU inputs; the
    #             toy shapes here fit entirely in VMEM so a single block wins.
    return img_feat, txt_feat


def init_params(key, in_channels):
    d_patch = in_channels * PATCH * PATCH
    k1, k2, k3, k4, k5 = jax.random.split(key, 5)
    return {
        "w_patch":    0.02 * jax.random.normal(k1, (d_patch, EMBED), jnp.float32),
        "b_patch":    0.02 * jax.random.normal(k2, (1, EMBED), jnp.float32),
        "w_img_proj": 0.02 * jax.random.normal(k3, (EMBED, EMBED), jnp.float32),
        "tok_table":  0.02 * jax.random.normal(k4, (VOCAB, EMBED), jnp.float32),
        "w_txt_proj": 0.02 * jax.random.normal(k5, (EMBED, EMBED), jnp.float32),
    }


# Pure-JAX reference (mirrors the original un-fused math) for a sanity check.
def _reference_forward(image, text, params):
    def enc_img(img):
        patches = _patchify(img.astype(jnp.float32))
        emb = jnp.einsum("bpd,de->bpe", patches, params["w_patch"]) + params["b_patch"]
        return jnp.mean(emb, axis=1) @ params["w_img_proj"]
    if image.ndim == 5:
        f = (enc_img(image[:, 0, ...]) + enc_img(image[:, 1, ...])) / 2
    else:
        f = enc_img(image)
    tok = jnp.take(params["tok_table"], text, axis=0)
    t = jnp.mean(tok, axis=1) @ params["w_txt_proj"]
    f = f / jnp.linalg.norm(f, axis=-1, keepdims=True)
    t = t / jnp.linalg.norm(t, axis=-1, keepdims=True)
    return f, t


if __name__ == "__main__":
    key = jax.random.PRNGKey(0)
    k_img, k_txt, k_par = jax.random.split(key, 3)

    B, C, H, W = 2, 4, 16, 16
    image = jax.random.normal(k_img, (B, C, H, W), jnp.float32)          # NCHW
    text = jax.random.randint(k_txt, (B, SEQ), 0, VOCAB, jnp.int32)
    params = init_params(k_par, C)

    fwd = jax.jit(clip_extractor_forward)

    img_feat, txt_feat = jax.block_until_ready(fwd(image, text, params))
    assert img_feat.shape == (B, EMBED) and txt_feat.shape == (B, EMBED)
    # features must be unit-norm after the fused L2 normalization
    assert bool(jnp.allclose(jnp.linalg.norm(img_feat, axis=-1), 1.0, atol=1e-5))
    assert bool(jnp.allclose(jnp.linalg.norm(txt_feat, axis=-1), 1.0, atol=1e-5))
    # match the pure-JAX reference (loose tol: mean/matmul reassociation + MXU rounding)
    ref_img, ref_txt = _reference_forward(image, text, params)
    assert bool(jnp.allclose(img_feat, ref_img, atol=5e-3))
    assert bool(jnp.allclose(txt_feat, ref_txt, atol=5e-3))

    # also exercise the 5-D (two-view) image branch from clip_forward
    image5 = jnp.stack([image, image + 0.1], axis=1)                     # [B,2,C,H,W]
    img_feat5, txt_feat5 = jax.block_until_ready(fwd(image5, text, params))
    assert img_feat5.shape == (B, EMBED)
    ref_img5, _ = _reference_forward(image5, text, params)
    assert bool(jnp.allclose(img_feat5, ref_img5, atol=5e-3))
    assert bool(jnp.allclose(jnp.linalg.norm(img_feat5, axis=-1), 1.0, atol=1e-5))

    print("KERNEL_OK")
</pallas_src>

<mosaic_0001>
module attributes {stable_mosaic.version = 11 : i64} {
  func.func @_clip_fused_kernel(%arg0: memref<2x4x256xf32, #tpu.memory_space<vmem>>, %arg1: memref<2x8xi32, #tpu.memory_space<vmem>>, %arg2: memref<256x32xf32, #tpu.memory_space<vmem>>, %arg3: memref<1x32xf32, #tpu.memory_space<vmem>>, %arg4: memref<32x32xf32, #tpu.memory_space<vmem>>, %arg5: memref<64x32xf32, #tpu.memory_space<vmem>>, %arg6: memref<32x32xf32, #tpu.memory_space<vmem>>, %arg7: memref<2x32xf32, #tpu.memory_space<vmem>>, %arg8: memref<2x32xf32, #tpu.memory_space<vmem>>) attributes {dimension_semantics = [], scalar_prefetch = 0 : i64, scratch_operands = 0 : i64, tpu.core_type = #tpu.core_type<tc>} {
    %c0 = arith.constant 0 : index
    %c0_0 = arith.constant 0 : index
    %c0_1 = arith.constant 0 : index
    %0 = vector.load %arg0[%c0, %c0_0, %c0_1] : memref<2x4x256xf32, #tpu.memory_space<vmem>>, vector<2x4x256xf32>
    %cst = arith.constant dense<0.000000e+00> : vector<2x256xf32>
    %1 = vector.multi_reduction <add>, %0, %cst [1] : vector<2x4x256xf32> to vector<2x256xf32>
    %cst_2 = arith.constant 4.000000e+00 : f32
    %2 = vector.broadcast %cst_2 : f32 to vector<2x256xf32>
    %3 = arith.divf %1, %2 : vector<2x256xf32>
    %c0_3 = arith.constant 0 : index
    %c0_4 = arith.constant 0 : index
    %4 = vector.load %arg2[%c0_3, %c0_4] : memref<256x32xf32, #tpu.memory_space<vmem>>, vector<256x32xf32>
    %cst_5 = arith.constant dense<0.000000e+00> : vector<2x32xf32>
    %5 = tpu.matmul %3, %4, %cst_5 {dimension_numbers = #tpu.dot_dimension_numbers<[1], [0], [0], [1], [0, 0, 1, 1], [], []>} : vector<2x256xf32>, vector<256x32xf32>, vector<2x32xf32> -> vector<2x32xf32>
    %c0_6 = arith.constant 0 : index
    %c0_7 = arith.constant 0 : index
    %6 = vector.load %arg3[%c0_6, %c0_7] : memref<1x32xf32, #tpu.memory_space<vmem>>, vector<1x32xf32>
    %7 = vector.broadcast %6 : vector<1x32xf32> to vector<2x32xf32>
    %8 = arith.addf %5, %7 : vector<2x32xf32>
    %c0_8 = arith.constant 0 : index
    %c0_9 = arith.constant 0 : index
    %9 = vector.load %arg4[%c0_8, %c0_9] : memref<32x32xf32, #tpu.memory_space<vmem>>, vector<32x32xf32>
    %cst_10 = arith.constant dense<0.000000e+00> : vector<2x32xf32>
    %10 = tpu.matmul %8, %9, %cst_10 {dimension_numbers = #tpu.dot_dimension_numbers<[1], [0], [0], [1], [0, 0, 1, 1], [], []>} : vector<2x32xf32>, vector<32x32xf32>, vector<2x32xf32> -> vector<2x32xf32>
    %c0_11 = arith.constant 0 : index
    %c0_12 = arith.constant 0 : index
    %11 = vector.load %arg1[%c0_11, %c0_12] : memref<2x8xi32, #tpu.memory_space<vmem>>, vector<2x8xi32>
    %12 = tpu.iota {dimensions = array<i32: 1>} : vector<2x64xi32>
    %cst_13 = arith.constant 0.000000e+00 : f32
    %13 = vector.broadcast %cst_13 : f32 to vector<2x64xf32>
    %14 = vector.extract_strided_slice %11 {offsets = [0, 0], sizes = [2, 1], strides = [1, 1]} : vector<2x8xi32> to vector<2x1xi32>
    %15 = vector.broadcast %14 : vector<2x1xi32> to vector<2x64xi32>
    %16 = arith.cmpi eq, %15, %12 : vector<2x64xi32>
    %17 = arith.extui %16 : vector<2x64xi1> to vector<2x64xi32>
    %18 = arith.sitofp %17 : vector<2x64xi32> to vector<2x64xf32>
    %19 = arith.addf %13, %18 : vector<2x64xf32>
    %20 = vector.extract_strided_slice %11 {offsets = [0, 1], sizes = [2, 1], strides = [1, 1]} : vector<2x8xi32> to vector<2x1xi32>
    %21 = vector.broadcast %20 : vector<2x1xi32> to vector<2x64xi32>
    %22 = arith.cmpi eq, %21, %12 : vector<2x64xi32>
    %23 = arith.extui %22 : vector<2x64xi1> to vector<2x64xi32>
    %24 = arith.sitofp %23 : vector<2x64xi32> to vector<2x64xf32>
    %25 = arith.addf %19, %24 : vector<2x64xf32>
    %26 = vector.extract_strided_slice %11 {offsets = [0, 2], sizes = [2, 1], strides = [1, 1]} : vector<2x8xi32> to vector<2x1xi32>
    %27 = vector.broadcast %26 : vector<2x1xi32> to vector<2x64xi32>
    %28 = arith.cmpi eq, %27, %12 : vector<2x64xi32>
    %29 = arith.extui %28 : vector<2x64xi1> to vector<2x64xi32>
    %30 = arith.sitofp %29 : vector<2x64xi32> to vector<2x64xf32>
    %31 = arith.addf %25, %30 : vector<2x64xf32>
    %32 = vector.extract_strided_slice %11 {offsets = [0, 3], sizes = [2, 1], strides = [1, 1]} : vector<2x8xi32> to vector<2x1xi32>
    %33 = vector.broadcast %32 : vector<2x1xi32> to vector<2x64xi32>
    %34 = arith.cmpi eq, %33, %12 : vector<2x64xi32>
    %35 = arith.extui %34 : vector<2x64xi1> to vector<2x64xi32>
    %36 = arith.sitofp %35 : vector<2x64xi32> to vector<2x64xf32>
    %37 = arith.addf %31, %36 : vector<2x64xf32>
    %38 = vector.extract_strided_slice %11 {offsets = [0, 4], sizes = [2, 1], strides = [1, 1]} : vector<2x8xi32> to vector<2x1xi32>
    %39 = vector.broadcast %38 : vector<2x1xi32> to vector<2x64xi32>
    %40 = arith.cmpi eq, %39, %12 : vector<2x64xi32>
    %41 = arith.extui %40 : vector<2x64xi1> to vector<2x64xi32>
    %42 = arith.sitofp %41 : vector<2x64xi32> to vector<2x64xf32>
    %43 = arith.addf %37, %42 : vector<2x64xf32>
    %44 = vector.extract_strided_slice %11 {offsets = [0, 5], sizes = [2, 1], strides = [1, 1]} : vector<2x8xi32> to vector<2x1xi32>
    %45 = vector.broadcast %44 : vector<2x1xi32> to vector<2x64xi32>
    %46 = arith.cmpi eq, %45, %12 : vector<2x64xi32>
    %47 = arith.extui %46 : vector<2x64xi1> to vector<2x64xi32>
    %48 = arith.sitofp %47 : vector<2x64xi32> to vector<2x64xf32>
    %49 = arith.addf %43, %48 : vector<2x64xf32>
    %50 = vector.extract_strided_slice %11 {offsets = [0, 6], sizes = [2, 1], strides = [1, 1]} : vector<2x8xi32> to vector<2x1xi32>
    %51 = vector.broadcast %50 : vector<2x1xi32> to vector<2x64xi32>
    %52 = arith.cmpi eq, %51, %12 : vector<2x64xi32>
    %53 = arith.extui %52 : vector<2x64xi1> to vector<2x64xi32>
    %54 = arith.sitofp %53 : vector<2x64xi32> to vector<2x64xf32>
    %55 = arith.addf %49, %54 : vector<2x64xf32>
    %56 = vector.extract_strided_slice %11 {offsets = [0, 7], sizes = [2, 1], strides = [1, 1]} : vector<2x8xi32> to vector<2x1xi32>
    %57 = vector.broadcast %56 : vector<2x1xi32> to vector<2x64xi32>
    %58 = arith.cmpi eq, %57, %12 : vector<2x64xi32>
    %59 = arith.extui %58 : vector<2x64xi1> to vector<2x64xi32>
    %60 = arith.sitofp %59 : vector<2x64xi32> to vector<2x64xf32>
    %61 = arith.addf %55, %60 : vector<2x64xf32>
    %cst_14 = arith.constant 1.250000e-01 : f32
    %62 = vector.broadcast %cst_14 : f32 to vector<2x64xf32>
    %63 = arith.mulf %61, %62 : vector<2x64xf32>
    %c0_15 = arith.constant 0 : index
    %c0_16 = arith.constant 0 : index
    %64 = vector.load %arg5[%c0_15, %c0_16] : memref<64x32xf32, #tpu.memory_space<vmem>>, vector<64x32xf32>
    %cst_17 = arith.constant dense<0.000000e+00> : vector<2x32xf32>
    %65 = tpu.matmul %63, %64, %cst_17 {dimension_numbers = #tpu.dot_dimension_numbers<[1], [0], [0], [1], [0, 0, 1, 1], [], []>} : vector<2x64xf32>, vector<64x32xf32>, vector<2x32xf32> -> vector<2x32xf32>
    %c0_18 = arith.constant 0 : index
    %c0_19 = arith.constant 0 : index
    %66 = vector.load %arg6[%c0_18, %c0_19] : memref<32x32xf32, #tpu.memory_space<vmem>>, vector<32x32xf32>
    %cst_20 = arith.constant dense<0.000000e+00> : vector<2x32xf32>
    %67 = tpu.matmul %65, %66, %cst_20 {dimension_numbers = #tpu.dot_dimension_numbers<[1], [0], [0], [1], [0, 0, 1, 1], [], []>} : vector<2x32xf32>, vector<32x32xf32>, vector<2x32xf32> -> vector<2x32xf32>
    %68 = arith.mulf %10, %10 : vector<2x32xf32>
    %cst_21 = arith.constant dense<0.000000e+00> : vector<2xf32>
    %69 = vector.multi_reduction <add>, %68, %cst_21 [1] : vector<2x32xf32> to vector<2xf32>
    %70 = vector.shape_cast %69 : vector<2xf32> to vector<2x1xf32>
    %71 = math.rsqrt %70 : vector<2x1xf32>
    %72 = vector.broadcast %71 : vector<2x1xf32> to vector<2x32xf32>
    %73 = arith.mulf %10, %72 : vector<2x32xf32>
    %c0_22 = arith.constant 0 : index
    %c0_23 = arith.constant 0 : index
    %74 = vector.load %arg7[%c0_22, %c0_23] : memref<2x32xf32, #tpu.memory_space<vmem>>, vector<2x32xf32>
    tpu.vector_store %arg7[%c0_22, %c0_23], %73 {strides = array<i32>} : memref<2x32xf32, #tpu.memory_space<vmem>>, vector<2x32xf32>,
    %75 = arith.mulf %67, %67 : vector<2x32xf32>
    %cst_24 = arith.constant dense<0.000000e+00> : vector<2xf32>
    %76 = vector.multi_reduction <add>, %75, %cst_24 [1] : vector<2x32xf32> to vector<2xf32>
    %77 = vector.shape_cast %76 : vector<2xf32> to vector<2x1xf32>
    %78 = math.rsqrt %77 : vector<2x1xf32>
    %79 = vector.broadcast %78 : vector<2x1xf32> to vector<2x32xf32>
    %80 = arith.mulf %67, %79 : vector<2x32xf32>
    %c0_25 = arith.constant 0 : index
    %c0_26 = arith.constant 0 : index
    %81 = vector.load %arg8[%c0_25, %c0_26] : memref<2x32xf32, #tpu.memory_space<vmem>>, vector<2x32xf32>
    tpu.vector_store %arg8[%c0_25, %c0_26], %80 {strides = array<i32>} : memref<2x32xf32, #tpu.memory_space<vmem>>, vector<2x32xf32>,
    return
  }
}

</mosaic_0001>

<bundles_post_ra>
// kernel: clip_extractor_forward.1
= control target key start
LH: loop header
LB: loop body
LE: loop exit
PB: predicated region body
PF: predicated region fallthrough
CT: control target
= control target key end

     0   :  { %14 = vsyncpa [#allocation3], 0  ;;  %v708_v4 = vmov 2   ;;  %v709_v6 = vmov 0   ;;  %vm38_vm0 = vcmask 1043456   ;;  %v710_v13 = vmov 0.0   ;;  %s979_s0 = inlined_call_operand.vmem [shape: f32[2,4,256], index: 0, kind: input, shape index: {}]   ;;  %s980_s1 = inlined_call_operand.vmem [shape: s32[2,8], index: 1, kind: input, shape index: {}]   ;;  %s981_s2 = inlined_call_operand.vmem [shape: f32[256,32], index: 2, kind: input, shape index: {}]   ;;  %s982_s3 = inlined_call_operand.vmem [shape: f32[1,32], index: 3, kind: input, shape index: {}]   ;;  %s983_s4 = inlined_call_operand.vmem [shape: f32[32,32], index: 4, kind: input, shape index: {}]   ;;  %s984_s5 = inlined_call_operand.vmem [shape: f32[64,32], index: 5, kind: input, shape index: {}]   ;;  %s985_s6 = inlined_call_operand.vmem [shape: f32[32,32], index: 6, kind: input, shape index: {}]   ;;  %s986_s7 = inlined_call_operand.hbm [shape: f32[2,32], index: 7, kind: output, shape index: {0}]   ;;  %s987_s8 = inlined_call_operand.hbm [shape: f32[2,32], index: 8, kind: output, shape index: {1}]  }
   0x1   :  { %v103_v0 = vld [vmem:[%s981_s2 + $0xf8] sm:$0xff]  ;;  %v102_v2 = vld [vmem:[%s981_s2 + $0xf0] sm:$0xff]  ;;  %651 = vset.pattern.permute.xlu1 %v708_v4  ;;  %v101_v5 = vld [vmem:[%s981_s2 + $0xe8] sm:$0xff]  ;;  %649 = vset.pattern.permute.xlu0 %v709_v6 }
   0x2   :  { %v87_v1 = vld [vmem:[%s981_s2 + $0x78] sm:$0xff]  ;;  %542 = vmatprep.subr.mxu0 %v103_v0  ;;  %v86_v3 = vld [vmem:[%s981_s2 + $0x70] sm:$0xff]  ;;  %v85_v7 = vld [vmem:[%s981_s2 + $0x68] sm:$0xff]  ;;  %596 = vmatprep.subr.mxu1 %v710_v13 }
   0x3   :  { %543 = vmatpush3.msra.mxu0 %v87_v1  ;;  %v100_v8 = vld [vmem:[%s981_s2 + $0xe0] sm:$0xff]  ;;  %v99_v10 = vld [vmem:[%s981_s2 + $0xd8] sm:$0xff]  ;;  %v98_v12 = vld [vmem:[%s981_s2 + $0xd0] sm:$0xff] }
   0x4   :  { %544 = vmatprep.subr.mxu0 %v102_v2  ;;  %v84_v9 = vld [vmem:[%s981_s2 + $0x60] sm:$0xff]  ;;  %v83_v11 = vld [vmem:[%s981_s2 + $0x58] sm:$0xff]  ;;  %v82_v14 = vld [vmem:[%s981_s2 + $0x50] sm:$0xff] }
   0x5   :  { %545 = vmatpush3.msra.mxu0 %v86_v3  ;;  %v97_v15 = vld [vmem:[%s981_s2 + $0xc8] sm:$0xff]  ;;  %v30_v17 = vld [vmem:[%s979_s0] sm:$0xff] }
   0x6   :  { %546 = vmatprep.subr.mxu0 %v101_v5  ;;  %v81_v16 = vld [vmem:[%s981_s2 + $0x48] sm:$0xff]  ;;  %v34_v19 = vcombine.high %v30_v17, %v30_v17  ;;  %v39_v20 = vsel %vm38_vm0, %v30_v17, 0.0  ;;  %v818_v21 = vld [vmem:[%s980_s1] sm:$0x3] }
   0x7   :  { %547 = vmatpush3.msra.mxu0 %v85_v7  ;;  %v31_v18 = vld [vmem:[%s979_s0 + $0x8] sm:$0xff] }
   0x8   :  { %548 = vmatprep.subr.mxu0 %v100_v8 }
   0x9   :  { %549 = vmatpush3.msra.mxu0 %v84_v9 }
   0xa   :  { %550 = vmatprep.subr.mxu0 %v99_v10 }
   0xb   :  { %551 = vmatpush3.msra.mxu0 %v83_v11 }
   0xc   :  { %552 = vmatprep.subr.mxu0 %v98_v12 }
   0xd   :  { %15 = vsyncpa [#allocation5], 0  ;;  %553 = vmatpush3.msra.mxu0 %v82_v14  ;;  %v96_v22 = vld [vmem:[%s981_s2 + $0xc0] sm:$0xff]  ;;  %v35_v23 = vcombine.high %v31_v18, %v31_v18  ;;  %v40_v24 = vrot.slane %v39_v20, 4  ;;  %v53_v25 = vsel %vm38_vm0, %v31_v18, 0.0  ;;  %286 = vperm.xlu1 %651, %v818_v21   ;;  %v46_v27 = vsel %vm38_vm0, %v34_v19, 0.0 }
   0xe   :  { %554 = vmatprep.subr.mxu0 %v97_v15  ;;  %v80_v26 = vld [vmem:[%s981_s2 + $0x40] sm:$0xff]  ;;  %v54_v28 = vrot.slane %v53_v25, 4  ;;  %272 = vperm.xlu0 %649, %v818_v21   ;;  %v95_v29 = vld [vmem:[%s981_s2 + $0xb8] sm:$0xff]  ;;  %v47_v30 = vrot.slane %v46_v27, 4  ;;  %v94_v36 = vld [vmem:[%s981_s2 + $0xb0] sm:$0xff]  ;;  %v711_v39 = vmov 3  }
   0xf   :  { %555 = vmatpush3.msra.mxu0 %v81_v16  ;;  %v60_v31 = vsel %vm38_vm0, %v35_v23, 0.0  ;;  %v41_v32 = vadd.f32 %v40_v24, %v39_v20  ;;  %v79_v33 = vld [vmem:[%s981_s2 + $0x38] sm:$0xff]  ;;  %v78_v40 = vld [vmem:[%s981_s2 + $0x30] sm:$0xff]  ;;  %v93_v43 = vld [vmem:[%s981_s2 + $0xa8] sm:$0xff]  ;;  %v712_v46 = vmov 1   ;;  %v713_v56 = vmov 4  }
  0x10   :  { %556 = vmatprep.subr.mxu0 %v96_v22  ;;  %v61_v34 = vrot.slane %v60_v31, 4  ;;  %v55_v35 = vadd.f32 %v54_v28, %v53_v25  ;;  %v48_v37 = vadd.f32 %v47_v30, %v46_v27  ;;  %v77_v47 = vld [vmem:[%s981_s2 + $0x28] sm:$0xff]  ;;  %v92_v50 = vld [vmem:[%s981_s2 + $0xa0] sm:$0xff]  ;;  %v91_v57 = vld [vmem:[%s981_s2 + $0x98] sm:$0xff]  ;;  %v714_v63 = vmov 5  }
  0x11   :  { %557 = vmatpush3.msra.mxu0 %v80_v26  ;;  %v42_v38 = vrot.slane %v41_v32, 2  ;;  %652 = vset.pattern.permute.xlu1 %v711_v39  ;;  %v76_v53 = vld [vmem:[%s981_s2 + $0x20] sm:$0xff]  ;;  %v75_v60 = vld [vmem:[%s981_s2 + $0x18] sm:$0xff]  ;;  %v90_v1 = vld [vmem:[%s981_s2 + $0x90] sm:$0xff]  ;;  %vm115_vm1 = vcmask 1041409   ;;  %v715_v9 = vmov 6   ;;  %v269_v22 = vlaneseq }
  0x12   :  { %558 = vmatprep.subr.mxu0 %v95_v29  ;;  %v62_v41 = vadd.f32 %v61_v34, %v60_v31  ;;  %v56_v42 = vrot.slane %v55_v35, 2  ;;  %293 = vperm.xlu1 %652, %v818_v21   ;;  %v49_v44 = vrot.slane %v48_v37, 2  ;;  %v193_v0 = vld [vmem:[%s983_s4 + $0x18] sm:$0xff]  ;;  %v74_v3 = vld [vmem:[%s981_s2 + $0x10] sm:$0xff]  ;;  %v89_v5 = vld [vmem:[%s981_s2 + $0x88] sm:$0xff]  ;;  %v716_v16 = vmov 7  }
  0x13   :  { %559 = vmatpush3.msra.mxu0 %v79_v33  ;;  %v43_v45 = vadd.f32 %v42_v38, %v41_v32  ;;  %650 = vset.pattern.permute.xlu0 %v712_v46  ;;  %v73_v10 = vld [vmem:[%s981_s2 + $0x8] sm:$0xff]  ;;  %v88_v12 = vld [vmem:[%s981_s2 + $0x80] sm:$0xff]  ;;  %v192_v18 = vld [vmem:[%s983_s4 + $0x10] sm:$0xff]  ;;  %vm717_vm2 = vmmov 0   ;;  %v270_v23 = vand.u32 127, %v269_v22  ;;  %vm194_vm9 = vcmask 261120  }
  0x14   :  { %560 = vmatprep.subr.mxu0 %v94_v36  ;;  %v63_v48 = vrot.slane %v62_v41, 2  ;;  %v57_v49 = vadd.f32 %v56_v42, %v55_v35  ;;  %279 = vperm.xlu0 %650, %v818_v21   ;;  %v50_v51 = vadd.f32 %v49_v44, %v48_v37  ;;  %v72_v14 = vld [vmem:[%s981_s2] sm:$0xff]  ;;  %v191_v19 = vld [vmem:[%s983_s4 + $0x8] sm:$0xff]  ;;  %v335_v44 = vld [vmem:[%s984_s5 + $0x38] sm:$0xff]  ;;  %vm336_vm12 = vcmask 523264  }
  0x15   :  { %561 = vmatpush3.msra.mxu0 %v78_v40  ;;  %v44_v52 = vrot.slane %v43_v45, 1  ;;  %597 = vmatpush3.msra.mxu1 %v193_v0  ;;  %v190_v20 = vld [vmem:[%s983_s4] sm:$0xff]  ;;  %v334_v46 = vld [vmem:[%s984_s5 + $0x30] sm:$0xff]  ;;  %vm488_vm13 = vcmask 254976  }
  0x16   :  { %562 = vmatprep.subr.mxu0 %v93_v43  ;;  %v64_v54 = vadd.f32 %v63_v48, %v62_v41  ;;  %v58_v55 = vrot.slane %v57_v49, 1  ;;  %653 = vset.pattern.permute.xlu1 %v713_v56  ;;  %v51_v58 = vrot.slane %v50_v51, 1  ;;  %v530_v39 = vld [vmem:[%s982_s3] ss:$0 sm:$0xff] }
  0x17   :  { %563 = vmatpush3.msra.mxu0 %v77_v47  ;;  %v45_v59 = vadd.f32 %v44_v52, %v43_v45  ;;  %300 = vperm.xlu1 %653, %v818_v21  }
  0x18   :  { %564 = vmatprep.subr.mxu0 %v92_v50  ;;  %v65_v61 = vrot.slane %v64_v54, 1  ;;  %v59_v62 = vadd.f32 %v58_v55, %v57_v49  ;;  %654 = vset.pattern.permute.xlu0 %v714_v63  ;;  %v52_v2 = vadd.f32 %v51_v58, %v50_v51  ;;  %v333_v49 = vld [vmem:[%s984_s5 + $0x28] sm:$0xff]  ;;  %v332_v51 = vld [vmem:[%s984_s5 + $0x20] sm:$0xff]  ;;  %v330_v55 = vld [vmem:[%s984_s5 + $0x10] sm:$0xff] }
  0x19   :  { %565 = vmatpush3.msra.mxu0 %v76_v53  ;;  %307 = vperm.xlu0 %654, %v818_v21   ;;  %v68_v7 = vmul.f32 0.25, %v45_v59  ;;  %v331_v53 = vld [vmem:[%s984_s5 + $0x18] sm:$0xff]  ;;  %v328_v58 = vld [vmem:[%s984_s5] sm:$0xff] }
  0x1a   :  { %566 = vmatprep.subr.mxu0 %v91_v57  ;;  %v66_v4 = vadd.f32 %v65_v61, %v64_v54  ;;  %v69_v6 = vmul.f32 0.25, %v52_v2  ;;  %v70_v8 = vmul.f32 0.25, %v59_v62  ;;  %598 = vmatprep.subr.mxu1 %v710_v13  ;;  %v329_v57 = vld [vmem:[%s984_s5 + $0x8] sm:$0xff]  ;;  %v412_v61 = vld [vmem:[%s985_s6 + $0x10] sm:$0xff]  ;;  %v410_v63 = vld [vmem:[%s985_s6] sm:$0xff] }
  0x1b   :  { %567 = vmatpush3.msra.mxu0 %v75_v60  ;;  %655 = vset.pattern.permute.xlu1 %v715_v9  ;;  %v413_v60 = vld [vmem:[%s985_s6 + $0x18] sm:$0xff]  ;;  %v411_v62 = vld [vmem:[%s985_s6 + $0x8] sm:$0xff]  ;;  %s718_s6 = smov [#allocation2]  }
  0x1c   :  { %568 = vmatprep.subr.mxu0 %v90_v1  ;;  %v71_v11 = vmul.f32 0.25, %v66_v4  ;;  %314 = vperm.xlu1 %655, %v818_v21   ;;  %v116_v17 = vsel %vm115_vm1, %v70_v8, %v68_v7  ;;  %s508_s10 = sshll.u32 %s718_s6, 4  ;;  %s509_s10 = int_to_ptr.vmem [resolvable:$true] %s508_s10 }
  0x1d   :  { %569 = vmatpush3.msra.mxu0 %v74_v3  ;;  %657 = vset.pattern.permute.xlu0 %v716_v16  ;;  %s664_s11 = scalar_lea.vmem %s509_s10, 32  ;;  %p669_p1 = scmp.lt.s32.totalorder %s509_s10, %s509_s10 }
  0x1e   :  { %570 = vmatprep.subr.mxu0 %v89_v5  ;;  %v117_v15 = vsel %vm115_vm1, %v71_v11, %v69_v6  ;;  %599 = vmatpush3.msra.mxu1 %v192_v18  ;;  %p665_p0 = scmp.ne.s32.totalorder %s509_s10, %s664_s11  ;;  %p670_p2 = scmp.lt.s32.totalorder %s664_s11, %s664_s11 }
  0x1f   :  { %571 = vmatpush3.msra.mxu0 %v73_v10  ;;  %184 = vmatprep.mubr.f32.mxu0 %v117_v15 }
  0x20   :  { %572 = vmatprep.subr.mxu0 %v88_v12  ;;  %656 = vset.pattern.permute.xlu1 %v716_v16  ;;  %p671_p3 = por %p670_p2, %p669_p1 }
  0x21   :  { %573 = vmatpush3.msra.mxu0 %v72_v14  ;;  %321 = vperm.xlu1 %656, %v818_v21  }
  0x22   :  { %185 = vmatmul.mubr.f32.vlgmr.msra.gmra.mxu0 %v116_v17  ;;  %600 = vmatprep.subr.mxu1 %v710_v13  ;;  %p672_p4 = pnand %p671_p3, %p665_p0 }
  0x23   :  { %601 = vmatpush3.msra.mxu1 %v191_v19  ;;  %604 = vmatprep.mubr.msk.f32.mxu1 %vm717_vm2, %v710_v13 }
  0x24   :  { %602 = vmatprep.subr.mxu1 %v710_v13 }
  0x25   :  { %603 = vmatpush3.msra.mxu1 %v190_v20 }
  0x26   :  { %607 = vmatprep.subr.mxu1 %v710_v13 }
  0x88   :  { %v287_v24 = vpop.permute.xlu1 %286 }
  0x89   :  { %v273_v21 = vpop.permute.xlu0 %272  ;;  %vm288_vm5 = vcmp.eq.s32.totalorder %v287_v24, %v270_v23 }
  0x8a   :  { %vm274_vm3 = vcmp.eq.s32.totalorder %v273_v21, %v270_v23  ;;  %v534_v30 = vsel %vm288_vm5, 1.0, %v710_v13 }
  0x8b   :  { %v532_v26 = vsel %vm274_vm3, 1.0, %v710_v13 }
  0x8d   :  { %v294_v27 = vpop.permute.xlu1 %293 }
  0x8e   :  { %vm295_vm6 = vcmp.eq.s32.totalorder %v294_v27, %v270_v23 }
  0x8f   :  { %v280_v25 = vpop.permute.xlu0 %279  ;;  %v535_v33 = vsel %vm295_vm6, 1.0, %v710_v13 }
  0x90   :  { %vm281_vm4 = vcmp.eq.s32.totalorder %v280_v25, %v270_v23 }
  0x91   :  { %v533_v28 = vsel %vm281_vm4, 1.0, %v710_v13 }
  0x92   :  { %v284_v29 = vadd.f32 %v533_v28, %v532_v26  ;;  %v301_v31 = vpop.permute.xlu1 %300 }
  0x93   :  { %vm302_vm7 = vcmp.eq.s32.totalorder %v301_v31, %v270_v23 }
  0x94   :  { %v291_v32 = vadd.f32 %v534_v30, %v284_v29  ;;  %v308_v35 = vpop.permute.xlu0 %307  ;;  %v536_v37 = vsel %vm302_vm7, 1.0, %v710_v13 }
  0x95   :  { %vm309_vm8 = vcmp.eq.s32.totalorder %v308_v35, %v270_v23 }
  0x96   :  { %v298_v36 = vadd.f32 %v535_v33, %v291_v32  ;;  %v537_v45 = vsel %vm309_vm8, 1.0, %v710_v13 }
  0x97   :  { %v315_v38 = vpop.permute.xlu1 %314 }
  0x98   :  { %v305_v42 = vadd.f32 %v536_v37, %v298_v36  ;;  %vm316_vm10 = vcmp.eq.s32.totalorder %v315_v38, %v270_v23 }
  0x99   :  { %v538_v50 = vsel %vm316_vm10, 1.0, %v710_v13 }
  0x9a   :  { %v312_v48 = vadd.f32 %v537_v45, %v305_v42 }
  0x9c   :  { %v322_v47 = vpop.permute.xlu1 %321  ;;  %v319_v52 = vadd.f32 %v538_v50, %v312_v48 }
  0x9d   :  { %vm323_vm11 = vcmp.eq.s32.totalorder %v322_v47, %v270_v23 }
  0x9e   :  { %v539_v54 = vsel %vm323_vm11, 1.0, %v710_v13 }
  0x9f   :  { %v326_v56 = vadd.f32 %v539_v54, %v319_v52 }
  0xa1   :  { %v327_v59 = vmul.f32 0.125, %v326_v56 }
  0xe2   :  { %v574_v34 = vpop.f32.mrf.mxu0 }
  0xe4   :  { %v575_v40 = vpop.f32.mrf.mxu0 }
  0xe5   :  { %v576_v41 = vadd.f32 %v575_v40, %v574_v34 }
  0xe7   :  { %v187_v43 = vadd.f32 %v576_v41, %v530_v39 }
  0xe9   :  { %605 = vmatmul.mubr.msk.f32.vlgmr.msra.gmra.mxu1 %vm194_vm9, %v187_v43 }
  0xea   :  { %608 = vmatpush3.msra.mxu1 %v335_v44  ;;  %623 = vmatprep.mubr.msk.f32.mxu1 %vm717_vm2, %v710_v13 }
  0xeb   :  { %609 = vmatprep.subr.mxu1 %v710_v13 }
  0xec   :  { %610 = vmatpush3.msra.mxu1 %v334_v46 }
  0xed   :  { %611 = vmatprep.subr.mxu1 %v710_v13 }
  0xee   :  { %612 = vmatpush3.msra.mxu1 %v333_v49 }
  0xef   :  { %613 = vmatprep.subr.mxu1 %v710_v13 }
  0xf0   :  { %614 = vmatpush3.msra.mxu1 %v332_v51 }
  0xf1   :  { %615 = vmatprep.subr.mxu1 %v710_v13 }
  0xf2   :  { %616 = vmatpush3.msra.mxu1 %v331_v53 }
  0xf3   :  { %617 = vmatprep.subr.mxu1 %v710_v13 }
  0xf4   :  { %618 = vmatpush3.msra.mxu1 %v330_v55 }
  0xf5   :  { %619 = vmatprep.subr.mxu1 %v710_v13 }
  0xf6   :  { %620 = vmatpush3.msra.mxu1 %v329_v57 }
  0xf7   :  { %621 = vmatprep.subr.mxu1 %v710_v13 }
  0xf8   :  { %622 = vmatpush3.msra.mxu1 %v328_v58 }
  0xf9   :  { %624 = vmatmul.mubr.msk.f32.vlgmr.msra.gmra.mxu1 %vm336_vm12, %v327_v59  ;;  %626 = vmatprep.subr.mxu1 %v710_v13 }
  0xfa   :  { %634 = vmatprep.mubr.msk.f32.mxu1 %vm717_vm2, %v710_v13  ;;  %627 = vmatpush3.msra.mxu1 %v413_v60 }
  0xfb   :  { %628 = vmatprep.subr.mxu1 %v710_v13 }
  0xfc   :  { %629 = vmatpush3.msra.mxu1 %v412_v61 }
  0xfd   :  { %630 = vmatprep.subr.mxu1 %v710_v13 }
  0xfe   :  { %631 = vmatpush3.msra.mxu1 %v411_v62 }
  0xff   :  { %632 = vmatprep.subr.mxu1 %v710_v13 }
 0x100   :  { %633 = vmatpush3.msra.mxu1 %v410_v63 }
 0x1a9   :  { %v264_v0 = vpop.f32.mrf.mxu1 }
 0x1aa   :  { %v487_v1 = vmul.f32 %v264_v0, %v264_v0 }
 0x1ab   :  { %v606_v2 = vpop.f32.mrf.mxu1 }
 0x1ac   :  { %v489_v3 = vsel %vm488_vm13, %v487_v1, 0.0 }
 0x1ad   :  { %490 = vadd.xlane.f32.xlu0 %v489_v3 }
 0x1b9   :  { %v406_v4 = vpop.f32.mrf.mxu1 }
 0x1ba   :  { %635 = vmatmul.mubr.msk.f32.vlgmr.msra.gmra.mxu1 %vm194_vm9, %v406_v4 }
 0x1bb   :  { %v625_v5 = vpop.f32.mrf.mxu1 }
 0x236   :  { %v491_v6 = vpop.xlane.xlu0 %490 }
 0x237   :  { %660 = vrsqrt.f32 %v491_v6 }
 0x244   :  { %v661_v7 = vpop.eup %660 }
 0x245   :  { %v493_v13 = vmul.f32 %v661_v7, %v264_v0 }
 0x247   :  { %494 = vst.msk [vmem:[#allocation2] sm:$0x3] %vm488_vm13, %v493_v13 }
 0x27a   :  { %v483_v8 = vpop.f32.mrf.mxu1 }
 0x27b   :  { %v495_v9 = vmul.f32 %v483_v8, %v483_v8 }
 0x27c   :  { %v636_v10 = vpop.f32.mrf.mxu1 }
 0x27d   :  { %v496_v11 = vsel %vm488_vm13, %v495_v9, 0.0 }
 0x27e   :  { %497 = vadd.xlane.f32.xlu1 %v496_v11 }
 0x27f   :  { %675 = shalt.err (!%p672_p4)
}
 0x280   :  { %511 = dma.vmem_to_hbm [thread:$0]  %s509_s10, 32, %s986_s7, [#allocation3]  }
 0x281   :  { %s719_s13 = smov [#allocation4]  }
 0x282   :  { %s518_s14 = sshll.u32 %s719_s13, 4  ;;  %s519_s14 = int_to_ptr.vmem [resolvable:$true] %s518_s14 }
 0x283   :  { %s684_s15 = scalar_lea.vmem %s519_s14, 32  ;;  %p689_p6 = scmp.lt.s32.totalorder %s519_s14, %s519_s14 }
 0x284   :  { %p685_p5 = scmp.ne.s32.totalorder %s519_s14, %s684_s15  ;;  %p690_p7 = scmp.lt.s32.totalorder %s684_s15, %s684_s15 }
 0x286   :  { %p691_p8 = por %p690_p7, %p689_p6 }
 0x288   :  { %p692_p9 = pnand %p691_p8, %p685_p5 }
 0x307   :  { %v498_v12 = vpop.xlane.xlu1 %497 }
 0x308   :  { %662 = vrsqrt.f32 %v498_v12 }
 0x315   :  { %v663_v14 = vpop.eup %662 }
 0x316   :  { %v500_v15 = vmul.f32 %v663_v14, %v483_v8 }
 0x318   :  { %501 = vst.msk [vmem:[#allocation4] sm:$0x3] %vm488_vm13, %v500_v15 }
 0x319   :  { %695 = shalt.err (!%p692_p9)
}
 0x31a   :  { %521 = dma.vmem_to_hbm [thread:$0]  %s519_s14, 32, %s987_s8, [#allocation5]  }
 0x31b   :  { %704 = dma.done.wait [#allocation3], 32  }
 0x31c   :  { %705 = vsyncadd [#allocation3], 4294967264 }
 0x31d   :  { %706 = dma.done.wait [#allocation5], 32  }
 0x31e   :  { %707 = vsyncadd [#allocation5], 4294967264 }
 0x31f   :  { %528 = vsyncpa [#allocation3], 1 }
 0x320   :  { %529 = vsyncpa [#allocation5], 1 }

</bundles_post_ra>
